<compile_context>
chip_gen: v6e
topology: v6e:2x2x1
jax: 0.10.0
libtpu: 0.0.40
codegen_flags: <defaults>
</compile_context>

<pallas_src>
import functools

import jax
import jax.numpy as jnp
import numpy as np
from jax import lax
from jax.experimental import pallas as pl

try:
    from scipy import ndimage as _ndimage      # fast 8-connected labeling
except Exception:                              # pragma: no cover
    _ndimage = None


# ---------------------------------------------------------------------------
# Fused whole-batch kernel (one grid step; B unrolled statically).
#
# Per batch element:
#   feature softmax (lane-axis) -> bilinear^T (C, C) -> column softmax
#   -> log-Z entropy as a lane-major (1, C) row -> X = attn @ f for ALL C
#   channels -> spatial-mean threshold masks, stored lane-dense as (C, HW).
# ---------------------------------------------------------------------------
def _grql_fused_kernel(f_ref, mask_ref, ent_ref, *, inv_hw):
    for bi in range(f_ref.shape[0]):               # B is tiny & static: unroll
        f = f_ref[bi]                              # (C, HW)

        # feature_norm = softmax(2*f, spatial) on the natural (C, HW) layout.
        z = 2.0 * f
        z = z - jnp.max(z, axis=-1, keepdims=True)
        ez = jnp.exp(z)
        fnorm = ez / jnp.sum(ez, axis=-1, keepdims=True)           # (C, HW)

        # bilinear^T[i, j] = sum_k f[i, k] * fnorm[j, k] = bilinear[j, i]
        # (contract the lane dim of both operands; Mosaic inserts one small
        # XLU transpose — that slot has plenty of slack here).
        bil_t = lax.dot_general(f, fnorm, (((1,), (1,)), ((), ())),
                                preferred_element_type=jnp.float32)  # (C, C)

        # attn^T = column softmax of bilinear^T; entropy via the log-Z
        # identity H_i = log(sum_j exp(bz_ji)) - sum_j attn^T_ji * bz_ji
        # (identical to sum(attn * clean(-log attn)) without log/isinf/where).
        # Axis-0 reductions -> entropy is already a lane-major (1, C) row.
        bz = bil_t - jnp.max(bil_t, axis=0, keepdims=True)
        be = jnp.exp(bz)
        s = jnp.sum(be, axis=0, keepdims=True)                      # (1, C)
        attn_t = be / s                                             # (C, C)
        ent_ref[bi] = jnp.log(s) - jnp.sum(attn_t * bz, axis=0, keepdims=True)

        # X = attn @ f for ALL C channels (MXU is <1% utilised either way;
        # computing only the selected rows would save nothing), then
        # mask = X > its spatial mean.  Lane-dense (C, HW) store.
        xp = lax.dot_general(attn_t, f, (((0,), (0,)), ((), ())),
                             preferred_element_type=jnp.float32)    # (C, HW)
        y = jnp.sum(xp, axis=-1, keepdims=True) * inv_hw            # (C, 1)
        mask_ref[bi] = (xp > y).astype(jnp.float32)


@functools.partial(jax.jit, static_argnames=("nums",))
def grql_masks(x, nums):
    """Everything up to the selected binary part masks M: (B, NUMS, H*W)."""
    b, c, h, w = x.shape
    hw = h * w
    f = x.reshape(b, c, hw).astype(jnp.float32)

    # Whole problem (~25 KiB resident) fits VMEM trivially on every
    # generation -> single grid step, full-array blocks, no pipelining needed.
    masks, ent = pl.pallas_call(
        functools.partial(_grql_fused_kernel, inv_hw=1.0 / hw),
        out_shape=(jax.ShapeDtypeStruct((b, c, hw), jnp.float32),   # all-C masks
                   jax.ShapeDtypeStruct((b, 1, c), jnp.float32)),   # lane-major entropy
        grid=(1,),
        in_specs=[pl.BlockSpec((b, c, hw), lambda i: (0, 0, 0))],
        out_specs=(pl.BlockSpec((b, c, hw), lambda i: (0, 0, 0)),
                   pl.BlockSpec((b, 1, c), lambda i: (0, 0, 0))),
    )(f)

    # Tiny XLA glue (same jit, no extra dispatch boundaries): ascending
    # entropy sort, keep the first `nums` channels, gather their mask rows.
    # (Note: jnp.argsort is stable while torch.sort is not guaranteed stable
    # -> exact entropy ties may pick different rows than the reference.)
    entropy = ent[:, 0, :]                                          # (B, C)
    parts_id = jnp.argsort(entropy, axis=1)[:, :nums]               # (B, NUMS)
    M = jnp.take_along_axis(masks, parts_id[:, :, None], axis=1)    # (B, NUMS, HW)
    M_bool = M > 0.5          # booleanise on-device: 4x smaller D2H payload
    return M, M_bool


# ---------------------------------------------------------------------------
# Host-side connected-component / bbox extraction (replaces skimage.measure).
# TODO(synk): iterative connected-component labeling has no Pallas equivalent;
#             it runs on the host (scipy.ndimage if present, numpy fallback).
# ---------------------------------------------------------------------------
_EIGHT = np.ones((3, 3), dtype=bool)   # 8-connectivity == skimage.measure.label default


def _label_8conn(mask):
    if _ndimage is not None:
        labels, n = _ndimage.label(mask, structure=_EIGHT)
        return labels, int(n)
    # numpy fallback: vectorized iterative min-label propagation (14x14 masks).
    h, w = mask.shape
    big = np.int64(np.iinfo(np.int64).max)
    lab = np.where(mask, np.arange(1, h * w + 1, dtype=np.int64).reshape(h, w), 0)
    for _ in range(h * w):
        pad = np.full((h + 2, w + 2), big, dtype=np.int64)
        pad[1:-1, 1:-1] = np.where(mask, lab, big)
        neigh = np.stack([pad[1 + dr:h + 1 + dr, 1 + dc:w + 1 + dc]
                          for dr in (-1, 0, 1) for dc in (-1, 0, 1)], axis=0)
        new = np.where(mask, neigh.min(axis=0), 0)
        if np.array_equal(new, lab):
            break
        lab = new
    vals = np.unique(lab[lab > 0])          # raster order of first pixels
    out = np.zeros_like(lab, dtype=np.int32)
    for k, v in enumerate(vals, start=1):
        out[lab == v] = k
    return out, len(vals)


def _bbox_coords(mask_hw):
    if not mask_hw.any():
        # TODO(synk): the PyTorch reference crashes on an all-False mask
        #             (max() of an empty area list); return a degenerate box.
        return [0, 0, 0, 0]
    labels, n = _label_8conn(mask_hw)
    areas = np.bincount(labels.ravel(), minlength=n + 1)[1:]
    max_label = int(np.argmax(areas)) + 1           # first max, like list.index(max)
    comp = labels == max_label
    rows = np.where(comp.any(axis=1))[0]
    cols = np.where(comp.any(axis=0))[0]
    rmin, rmax = int(rows[0]), int(rows[-1])
    cmin, cmax = int(cols[0]), int(cols[-1])
    # skimage regionprops bbox = (min_row, min_col, max_row + 1, max_col + 1)
    x_lt = max(rmin * 32 - 1, 0)
    y_lt = max(cmin * 32 - 1, 0)
    x_rl = (rmax + 1) * 32 - 1
    y_rl = (cmax + 1) * 32 - 1
    return [x_lt, y_lt, x_rl, y_rl]


def grql_forward(x, nums):
    b, c, h, w = x.shape
    M, M_bool = grql_masks(x, nums)                  # (B, NUMS, H*W): f32 / bool
    M_host = np.asarray(jax.device_get(M_bool))      # bool D2H (4x smaller than f32)
    coordinates = []
    for i in range(b):
        xy = []
        for j in range(nums):
            # the original module hard-codes reshape(14, 14); h == w == 14 here
            xy.append(_bbox_coords(M_host[i, j].reshape(h, w)))
        coordinates.append(xy)
    return coordinates, M


if __name__ == "__main__":
    key = jax.random.PRNGKey(0)
    B, C, H, W = 2, 16, 14, 14      # forward hard-codes 14x14 spatial masks
    NUMS = 4
    x = jax.random.normal(key, (B, C, H, W), dtype=jnp.float32)

    coordinates, M = grql_forward(x, NUMS)
    jax.block_until_ready(M)

    assert M.shape == (B, NUMS, H * W)
    assert len(coordinates) == B and len(coordinates[0]) == NUMS
    assert all(len(cc) == 4 for row in coordinates for cc in row)
    print("KERNEL_OK")
</pallas_src>

<mosaic_0001>
module attributes {stable_mosaic.version = 11 : i64} {
  func.func @_grql_fused_kernel(%arg0: i32, %arg1: memref<2x16x196xf32, #tpu.memory_space<vmem>>, %arg2: memref<2x16x196xf32, #tpu.memory_space<vmem>>, %arg3: memref<2x1x16xf32, #tpu.memory_space<vmem>>) attributes {dimension_semantics = [#tpu.dimension_semantics<arbitrary>], iteration_bounds = array<i64: 1>, scalar_prefetch = 0 : i64, scratch_operands = 0 : i64, tpu.core_type = #tpu.core_type<tc>, window_params = [{pipeline_mode = #tpu.pipeline_mode<synchronous>, transform_indices = @transform_0, window_bounds = array<i64: 2, 16, 196>}, {pipeline_mode = #tpu.pipeline_mode<synchronous>, transform_indices = @transform_1, window_bounds = array<i64: 2, 16, 196>}, {pipeline_mode = #tpu.pipeline_mode<synchronous>, transform_indices = @transform_2, window_bounds = array<i64: 2, 1, 16>}]} {
    %c0 = arith.constant 0 : index
    %c0_0 = arith.constant 0 : index
    %c0_1 = arith.constant 0 : index
    %0 = vector.load %arg1[%c0, %c0_0, %c0_1] : memref<2x16x196xf32, #tpu.memory_space<vmem>>, vector<1x16x196xf32>
    %1 = vector.shape_cast %0 : vector<1x16x196xf32> to vector<16x196xf32>
    %cst = arith.constant 2.000000e+00 : f32
    %2 = vector.broadcast %cst : f32 to vector<16x196xf32>
    %3 = arith.mulf %2, %1 : vector<16x196xf32>
    %cst_2 = arith.constant dense<0xFF800000> : vector<16xf32>
    %4 = vector.multi_reduction <maximumf>, %3, %cst_2 [1] : vector<16x196xf32> to vector<16xf32>
    %5 = vector.shape_cast %4 : vector<16xf32> to vector<16x1xf32>
    %6 = vector.broadcast %5 : vector<16x1xf32> to vector<16x196xf32>
    %7 = arith.subf %3, %6 : vector<16x196xf32>
    %8 = math.exp %7 : vector<16x196xf32>
    %cst_3 = arith.constant dense<0.000000e+00> : vector<16xf32>
    %9 = vector.multi_reduction <add>, %8, %cst_3 [1] : vector<16x196xf32> to vector<16xf32>
    %10 = vector.shape_cast %9 : vector<16xf32> to vector<16x1xf32>
    %11 = vector.broadcast %10 : vector<16x1xf32> to vector<16x196xf32>
    %12 = arith.divf %8, %11 : vector<16x196xf32>
    %cst_4 = arith.constant dense<0.000000e+00> : vector<16x16xf32>
    %13 = tpu.matmul %1, %12, %cst_4 {dimension_numbers = #tpu.dot_dimension_numbers<[1], [1], [0], [0], [0, 0, 1, 0], [], []>} : vector<16x196xf32>, vector<16x196xf32>, vector<16x16xf32> -> vector<16x16xf32>
    %cst_5 = arith.constant dense<0xFF800000> : vector<16xf32>
    %14 = vector.multi_reduction <maximumf>, %13, %cst_5 [0] : vector<16x16xf32> to vector<16xf32>
    %15 = vector.shape_cast %14 : vector<16xf32> to vector<1x16xf32>
    %16 = vector.broadcast %15 : vector<1x16xf32> to vector<16x16xf32>
    %17 = arith.subf %13, %16 : vector<16x16xf32>
    %18 = math.exp %17 : vector<16x16xf32>
    %cst_6 = arith.constant dense<0.000000e+00> : vector<16xf32>
    %19 = vector.multi_reduction <add>, %18, %cst_6 [0] : vector<16x16xf32> to vector<16xf32>
    %20 = vector.shape_cast %19 : vector<16xf32> to vector<1x16xf32>
    %21 = vector.broadcast %20 : vector<1x16xf32> to vector<16x16xf32>
    %22 = arith.divf %18, %21 : vector<16x16xf32>
    %23 = math.log %20 : vector<1x16xf32>
    %24 = arith.mulf %22, %17 : vector<16x16xf32>
    %cst_7 = arith.constant dense<0.000000e+00> : vector<16xf32>
    %25 = vector.multi_reduction <add>, %24, %cst_7 [0] : vector<16x16xf32> to vector<16xf32>
    %26 = vector.shape_cast %25 : vector<16xf32> to vector<1x16xf32>
    %27 = arith.subf %23, %26 : vector<1x16xf32>
    %c0_8 = arith.constant 0 : index
    %c0_9 = arith.constant 0 : index
    %c0_10 = arith.constant 0 : index
    %28 = vector.load %arg3[%c0_8, %c0_9, %c0_10] : memref<2x1x16xf32, #tpu.memory_space<vmem>>, vector<1x1x16xf32>
    %29 = vector.shape_cast %28 : vector<1x1x16xf32> to vector<1x16xf32>
    %30 = vector.shape_cast %27 : vector<1x16xf32> to vector<1x1x16xf32>
    tpu.vector_store %arg3[%c0_8, %c0_9, %c0_10], %30 {strides = array<i32>} : memref<2x1x16xf32, #tpu.memory_space<vmem>>, vector<1x1x16xf32>,
    %cst_11 = arith.constant dense<0.000000e+00> : vector<16x196xf32>
    %31 = tpu.matmul %22, %1, %cst_11 {dimension_numbers = #tpu.dot_dimension_numbers<[0], [0], [1], [1], [0, 1, 1, 1], [], []>} : vector<16x16xf32>, vector<16x196xf32>, vector<16x196xf32> -> vector<16x196xf32>
    %cst_12 = arith.constant dense<0.000000e+00> : vector<16xf32>
    %32 = vector.multi_reduction <add>, %31, %cst_12 [1] : vector<16x196xf32> to vector<16xf32>
    %33 = vector.shape_cast %32 : vector<16xf32> to vector<16x1xf32>
    %cst_13 = arith.constant 0.00510204071 : f32
    %34 = vector.broadcast %cst_13 : f32 to vector<16x1xf32>
    %35 = arith.mulf %33, %34 : vector<16x1xf32>
    %36 = vector.broadcast %35 : vector<16x1xf32> to vector<16x196xf32>
    %37 = arith.cmpf ogt, %31, %36 : vector<16x196xf32>
    %38 = arith.extui %37 : vector<16x196xi1> to vector<16x196xi32>
    %39 = arith.sitofp %38 : vector<16x196xi32> to vector<16x196xf32>
    %c0_14 = arith.constant 0 : index
    %c0_15 = arith.constant 0 : index
    %c0_16 = arith.constant 0 : index
    %40 = vector.load %arg2[%c0_14, %c0_15, %c0_16] : memref<2x16x196xf32, #tpu.memory_space<vmem>>, vector<1x16x196xf32>
    %41 = vector.shape_cast %40 : vector<1x16x196xf32> to vector<16x196xf32>
    %42 = vector.shape_cast %39 : vector<16x196xf32> to vector<1x16x196xf32>
    tpu.vector_store %arg2[%c0_14, %c0_15, %c0_16], %42 {strides = array<i32>} : memref<2x16x196xf32, #tpu.memory_space<vmem>>, vector<1x16x196xf32>,
    %c1 = arith.constant 1 : index
    %c0_17 = arith.constant 0 : index
    %c0_18 = arith.constant 0 : index
    %43 = vector.load %arg1[%c1, %c0_17, %c0_18] : memref<2x16x196xf32, #tpu.memory_space<vmem>>, vector<1x16x196xf32>
    %44 = vector.shape_cast %43 : vector<1x16x196xf32> to vector<16x196xf32>
    %cst_19 = arith.constant 2.000000e+00 : f32
    %45 = vector.broadcast %cst_19 : f32 to vector<16x196xf32>
    %46 = arith.mulf %45, %44 : vector<16x196xf32>
    %cst_20 = arith.constant dense<0xFF800000> : vector<16xf32>
    %47 = vector.multi_reduction <maximumf>, %46, %cst_20 [1] : vector<16x196xf32> to vector<16xf32>
    %48 = vector.shape_cast %47 : vector<16xf32> to vector<16x1xf32>
    %49 = vector.broadcast %48 : vector<16x1xf32> to vector<16x196xf32>
    %50 = arith.subf %46, %49 : vector<16x196xf32>
    %51 = math.exp %50 : vector<16x196xf32>
    %cst_21 = arith.constant dense<0.000000e+00> : vector<16xf32>
    %52 = vector.multi_reduction <add>, %51, %cst_21 [1] : vector<16x196xf32> to vector<16xf32>
    %53 = vector.shape_cast %52 : vector<16xf32> to vector<16x1xf32>
    %54 = vector.broadcast %53 : vector<16x1xf32> to vector<16x196xf32>
    %55 = arith.divf %51, %54 : vector<16x196xf32>
    %cst_22 = arith.constant dense<0.000000e+00> : vector<16x16xf32>
    %56 = tpu.matmul %44, %55, %cst_22 {dimension_numbers = #tpu.dot_dimension_numbers<[1], [1], [0], [0], [0, 0, 1, 0], [], []>} : vector<16x196xf32>, vector<16x196xf32>, vector<16x16xf32> -> vector<16x16xf32>
    %cst_23 = arith.constant dense<0xFF800000> : vector<16xf32>
    %57 = vector.multi_reduction <maximumf>, %56, %cst_23 [0] : vector<16x16xf32> to vector<16xf32>
    %58 = vector.shape_cast %57 : vector<16xf32> to vector<1x16xf32>
    %59 = vector.broadcast %58 : vector<1x16xf32> to vector<16x16xf32>
    %60 = arith.subf %56, %59 : vector<16x16xf32>
    %61 = math.exp %60 : vector<16x16xf32>
    %cst_24 = arith.constant dense<0.000000e+00> : vector<16xf32>
    %62 = vector.multi_reduction <add>, %61, %cst_24 [0] : vector<16x16xf32> to vector<16xf32>
    %63 = vector.shape_cast %62 : vector<16xf32> to vector<1x16xf32>
    %64 = vector.broadcast %63 : vector<1x16xf32> to vector<16x16xf32>
    %65 = arith.divf %61, %64 : vector<16x16xf32>
    %66 = math.log %63 : vector<1x16xf32>
    %67 = arith.mulf %65, %60 : vector<16x16xf32>
    %cst_25 = arith.constant dense<0.000000e+00> : vector<16xf32>
    %68 = vector.multi_reduction <add>, %67, %cst_25 [0] : vector<16x16xf32> to vector<16xf32>
    %69 = vector.shape_cast %68 : vector<16xf32> to vector<1x16xf32>
    %70 = arith.subf %66, %69 : vector<1x16xf32>
    %c1_26 = arith.constant 1 : index
    %c0_27 = arith.constant 0 : index
    %c0_28 = arith.constant 0 : index
    %71 = vector.load %arg3[%c1_26, %c0_27, %c0_28] : memref<2x1x16xf32, #tpu.memory_space<vmem>>, vector<1x1x16xf32>
    %72 = vector.shape_cast %71 : vector<1x1x16xf32> to vector<1x16xf32>
    %73 = vector.shape_cast %70 : vector<1x16xf32> to vector<1x1x16xf32>
    tpu.vector_store %arg3[%c1_26, %c0_27, %c0_28], %73 {strides = array<i32>} : memref<2x1x16xf32, #tpu.memory_space<vmem>>, vector<1x1x16xf32>,
    %cst_29 = arith.constant dense<0.000000e+00> : vector<16x196xf32>
    %74 = tpu.matmul %65, %44, %cst_29 {dimension_numbers = #tpu.dot_dimension_numbers<[0], [0], [1], [1], [0, 1, 1, 1], [], []>} : vector<16x16xf32>, vector<16x196xf32>, vector<16x196xf32> -> vector<16x196xf32>
    %cst_30 = arith.constant dense<0.000000e+00> : vector<16xf32>
    %75 = vector.multi_reduction <add>, %74, %cst_30 [1] : vector<16x196xf32> to vector<16xf32>
    %76 = vector.shape_cast %75 : vector<16xf32> to vector<16x1xf32>
    %cst_31 = arith.constant 0.00510204071 : f32
    %77 = vector.broadcast %cst_31 : f32 to vector<16x1xf32>
    %78 = arith.mulf %76, %77 : vector<16x1xf32>
    %79 = vector.broadcast %78 : vector<16x1xf32> to vector<16x196xf32>
    %80 = arith.cmpf ogt, %74, %79 : vector<16x196xf32>
    %81 = arith.extui %80 : vector<16x196xi1> to vector<16x196xi32>
    %82 = arith.sitofp %81 : vector<16x196xi32> to vector<16x196xf32>
    %c1_32 = arith.constant 1 : index
    %c0_33 = arith.constant 0 : index
    %c0_34 = arith.constant 0 : index
    %83 = vector.load %arg2[%c1_32, %c0_33, %c0_34] : memref<2x16x196xf32, #tpu.memory_space<vmem>>, vector<1x16x196xf32>
    %84 = vector.shape_cast %83 : vector<1x16x196xf32> to vector<16x196xf32>
    %85 = vector.shape_cast %82 : vector<16x196xf32> to vector<1x16x196xf32>
    tpu.vector_store %arg2[%c1_32, %c0_33, %c0_34], %85 {strides = array<i32>} : memref<2x16x196xf32, #tpu.memory_space<vmem>>, vector<1x16x196xf32>,
    return
  }
  func.func @transform_0(%arg0: i32) -> (i32, i32, i32) {
    %c0_i32 = arith.constant 0 : i32
    %c0_i32_0 = arith.constant 0 : i32
    %c0_i32_1 = arith.constant 0 : i32
    %c0_i32_2 = arith.constant 0 : i32
    return %c0_i32, %c0_i32_0, %c0_i32_1 : i32, i32, i32
  }
  func.func @transform_1(%arg0: i32) -> (i32, i32, i32) {
    %c0_i32 = arith.constant 0 : i32
    %c0_i32_0 = arith.constant 0 : i32
    %c0_i32_1 = arith.constant 0 : i32
    %c0_i32_2 = arith.constant 0 : i32
    return %c0_i32, %c0_i32_0, %c0_i32_1 : i32, i32, i32
  }
  func.func @transform_2(%arg0: i32) -> (i32, i32, i32) {
    %c0_i32 = arith.constant 0 : i32
    %c0_i32_0 = arith.constant 0 : i32
    %c0_i32_1 = arith.constant 0 : i32
    %c0_i32_2 = arith.constant 0 : i32
    return %c0_i32, %c0_i32_0, %c0_i32_1 : i32, i32, i32
  }
}

</mosaic_0001>

<bundles_post_ra>
// kernel: grql_masks.1
= control target key start
LH: loop header
LB: loop body
LE: loop exit
PB: predicated region body
PF: predicated region fallthrough
CT: control target
= control target key end

     0   :  { %vm18_vm0 = vcmask 556032   ;;  %vm140_vm1 = vcmask 130048   ;;  %vm182_vm2 = vcmask 122880   ;;  %s909_s0 = inlined_call_operand.vmem [shape: f32[2,16,196], index: 0, kind: input, shape index: {}]   ;;  %s910_s2 = inlined_call_operand.vmem [shape: f32[2,1,16], index: 2, kind: output, shape index: {1}]   ;;  %s911_s1 = inlined_call_operand.vmem [shape: f32[2,16,196], index: 1, kind: output, shape index: {0}]  }
   0x1   :  { %v737_v0 = vld [vmem:[%s909_s0 + $0x10] sm:$0xff]  ;;  %v742_v1 = vld [vmem:[%s909_s0 + $0x18] sm:$0xff]  ;;  %v747_v2 = vld [vmem:[%s909_s0] sm:$0xff] }
   0x2   :  { %v16_v3 = vmul.f32 2.0, %v737_v0  ;;  %v17_v4 = vmul.f32 2.0, %v742_v1  ;;  %v11_v5 = vld [vmem:[%s909_s0 + $0x8] sm:$0xff]  ;;  %250 = vmatprep.subr.mxu1 %v742_v1  ;;  %v14_v6 = vmul.f32 2.0, %v747_v2  ;;  %v764_v12 = vld [vmem:[%s909_s0 + $0x30] sm:$0xff]  ;;  %v769_v13 = vld [vmem:[%s909_s0 + $0x38] sm:$0xff] }
   0x3   :  { %v15_v7 = vmul.f32 2.0, %v11_v5  ;;  %650 = vmatprep.mubr.msk.f32.mxu0 %vm18_vm0, %v11_v5  ;;  %251 = vmatpush1.msra.mxu1 %v737_v0  ;;  %v332_v14 = vmul.f32 2.0, %v764_v12  ;;  %v333_v15 = vmul.f32 2.0, %v769_v13  ;;  %v777_v28 = vld [vmem:[%s909_s0 + $0x28] sm:$0xff]  ;;  %v783_v32 = vld [vmem:[%s909_s0 + $0x20] sm:$0xff] }
   0x4   :  { %v23_v8 = vsel %vm18_vm0, %v17_v4, -inf  ;;  %252 = vmatprep.subr.mxu1 %v11_v5  ;;  %v331_v33 = vmul.f32 2.0, %v777_v28  ;;  %v330_v37 = vmul.f32 2.0, %v783_v32 }
   0x5   :  { %v24_v9 = vmax.f32 %v16_v3, %v23_v8  ;;  %v19_v10 = vsel %vm18_vm0, %v15_v7, -inf  ;;  %253 = vmatpush1.msra.mxu1 %v747_v2  ;;  %v338_v16 = vsel %vm18_vm0, %v333_v15, -inf  ;;  %v718_v8 = vmov 0.0  }
   0x6   :  { %v20_v11 = vmax.f32 %v14_v6, %v19_v10  ;;  %v339_v17 = vmax.f32 %v332_v14, %v338_v16  ;;  %v334_v39 = vsel %vm18_vm0, %v331_v33, -inf  ;;  %286 = vmatprep.mubr.f32.mxu1 %v718_v8 }
   0x7   :  { %25 = vmax.xlane.f32.xlu0 %v24_v9  ;;  %v335_v41 = vmax.f32 %v330_v37, %v334_v39 }
   0xb   :  { %21 = vmax.xlane.f32.xlu0 %v20_v11 }
   0xf   :  { %340 = vmax.xlane.f32.xlu0 %v339_v17 }
  0x90   :  { %v26_v18 = vpop.xlane.xlu0 %25 }
  0x91   :  { %v29_v19 = vsub.f32 %v16_v3, %v26_v18  ;;  %v30_v20 = vsub.f32 %v17_v4, %v26_v18 }
  0x93   :  { %v35_v21 = vmul.f32 1.442695, %v29_v19  ;;  %v37_v22 = vmul.f32 1.442695, %v30_v20 }
  0x94   :  { %v22_v23 = vpop.xlane.xlu0 %21 }
  0x95   :  { %678 = vpow2.f32 %v35_v21  ;;  %v27_v24 = vsub.f32 %v14_v6, %v22_v23  ;;  %v28_v25 = vsub.f32 %v15_v7, %v22_v23 }
  0x96   :  { %680 = vpow2.f32 %v37_v22 }
  0x97   :  { %v31_v26 = vmul.f32 1.442695, %v27_v24  ;;  %v33_v27 = vmul.f32 1.442695, %v28_v25 }
  0x98   :  { %v341_v42 = vpop.xlane.xlu0 %340 }
  0x99   :  { %682 = vpow2.f32 %v31_v26  ;;  %v344_v43 = vsub.f32 %v332_v14, %v341_v42  ;;  %v345_v44 = vsub.f32 %v333_v15, %v341_v42 }
  0x9a   :  { %684 = vpow2.f32 %v33_v27 }
  0x9b   :  { %v350_v45 = vmul.f32 1.442695, %v344_v43  ;;  %v352_v46 = vmul.f32 1.442695, %v345_v44 }
  0x9d   :  { %686 = vpow2.f32 %v350_v45 }
  0x9e   :  { %688 = vpow2.f32 %v352_v46 }
  0xa2   :  { %v679_v29 = vpop.eup %678 }
  0xa3   :  { %v681_v30 = vpop.eup %680 }
  0xa4   :  { %v43_v31 = vsel %vm18_vm0, %v681_v30, 0.0 }
  0xa5   :  { %v44_v34 = vadd.f32 %v679_v29, %v43_v31 }
  0xa6   :  { %v683_v35 = vpop.eup %682 }
  0xa7   :  { %v685_v36 = vpop.eup %684  ;;  %45 = vadd.xlane.f32.xlu1 %v44_v34 }
  0xa8   :  { %v39_v38 = vsel %vm18_vm0, %v685_v36, 0.0 }
  0xa9   :  { %v40_v40 = vadd.f32 %v683_v35, %v39_v38 }
  0xaa   :  { %v789_v47 = vpop.eup %686 }
  0xab   :  { %41 = vadd.xlane.f32.xlu1 %v40_v40  ;;  %v689_v48 = vpop.eup %688 }
  0xac   :  { %v358_v49 = vsel %vm18_vm0, %v689_v48, 0.0 }
  0xad   :  { %v359_v50 = vadd.f32 %v789_v47, %v358_v49 }
  0xaf   :  { %336 = vmax.xlane.f32.xlu1 %v335_v41  ;;  %360 = vadd.xlane.f32.xlu0 %v359_v50 }
 0x130   :  { %v46_v51 = vpop.xlane.xlu1 %45 }
 0x131   :  { %690 = vrcp.f32 %v46_v51 }
 0x134   :  { %v42_v52 = vpop.xlane.xlu1 %41 }
 0x135   :  { %692 = vrcp.f32 %v42_v52 }
 0x138   :  { %v337_v53 = vpop.xlane.xlu1 %336  ;;  %v361_v6 = vpop.xlane.xlu0 %360 }
 0x139   :  { %v342_v54 = vsub.f32 %v330_v37, %v337_v53  ;;  %v343_v55 = vsub.f32 %v331_v33, %v337_v53 }
 0x13b   :  { %v346_v56 = vmul.f32 1.442695, %v342_v54  ;;  %v348_v57 = vmul.f32 1.442695, %v343_v55 }
 0x13d   :  { %694 = vpow2.f32 %v346_v56 }
 0x13e   :  { %v691_v58 = vpop.eup %690  ;;  %696 = vpow2.f32 %v348_v57 }
 0x13f   :  { %v52_v59 = vmul.f32 %v691_v58, %v681_v30  ;;  %v51_v60 = vmul.f32 %v691_v58, %v679_v29  ;;  %698 = vrcp.f32 %v361_v6 }
 0x141   :  { %648 = vmatprep.subr.msk.mxu0 %vm18_vm0, %v52_v59 }
 0x142   :  { %v693_v61 = vpop.eup %692  ;;  %94 = vmatpush1.xpose.msra.mxu0 %v51_v60 }
 0x143   :  { %v49_v62 = vmul.f32 %v693_v61, %v685_v36  ;;  %v48_v63 = vmul.f32 %v693_v61, %v683_v35 }
 0x145   :  { %649 = vmatprep.subr.msk.mxu0 %vm18_vm0, %v49_v62 }
 0x146   :  { %96 = vmatpush1.xpose.msra.mxu0 %v48_v63 }
 0x147   :  { %564 = vmatprep.subr.mxu0 %v769_v13 }
 0x149   :  { %130 = vmatmul.mubr.f32.vlgmr.msra.gmra.mxu0 %v747_v2 }
 0x14a   :  { %v797_v3 = vpop.eup %694  ;;  %651 = vmatprep.mubr.msk.f32.mxu0 %vm18_vm0, %v742_v1  ;;  %565 = vmatpush1.msra.mxu0 %v764_v12 }
 0x14b   :  { %v802_v4 = vpop.eup %696  ;;  %566 = vmatprep.subr.mxu0 %v777_v28 }
 0x14c   :  { %v354_v5 = vsel %vm18_vm0, %v802_v4, 0.0  ;;  %567 = vmatpush1.msra.mxu0 %v783_v32  ;;  %v810_v7 = vpop.eup %698 }
 0x14d   :  { %135 = vmatmul.mubr.f32.gmra.mxu0 %v737_v0  ;;  %v355_v2 = vadd.f32 %v797_v3, %v354_v5  ;;  %v367_v1 = vmul.f32 %v810_v7, %v689_v48  ;;  %v366_v61 = vmul.f32 %v810_v7, %v789_v47 }
 0x14e   :  { %600 = vmatprep.mubr.f32.mxu0 %v718_v8 }
 0x14f   :  { %356 = vadd.xlane.f32.xlu1 %v355_v2  ;;  %662 = vmatprep.subr.msk.mxu1 %vm18_vm0, %v367_v1 }
 0x1d8   :  { %v357_v58 = vpop.xlane.xlu1 %356 }
 0x209   :  { %v131_v9 = vpop.f32.mrf.mxu0 }
 0x20a   :  { %v141_v11 = vsel %vm140_vm1, %v131_v9, -inf }
 0x20b   :  { %v133_v10 = vpop.f32.mrf.mxu0 }
 0x20d   :  { %v136_v0 = vpop.f32.mrf.mxu0 }
 0x20e   :  { %v142_v14 = vsel %vm140_vm1, %v136_v0, -inf }
 0x20f   :  { %v143_v15 = vmax.f32 %v141_v11, %v142_v14  ;;  %v138_v16 = vpop.f32.mrf.mxu0 }
 0x211   :  { %v144_v17 = vrot.slane %v143_v15, 4 }
 0x213   :  { %v145_v18 = vmax.f32 %v143_v15, %v144_v17 }
 0x215   :  { %v146_v19 = vrot.slane %v145_v18, 2 }
 0x217   :  { %v147_v20 = vmax.f32 %v145_v18, %v146_v19 }
 0x219   :  { %v148_v21 = vrot.slane %v147_v20, 1 }
 0x21b   :  { %v149_v22 = vmax.f32 %v147_v20, %v148_v21 }
 0x21d   :  { %v150_v23 = vsub.f32 %v131_v9, %v149_v22  ;;  %v151_v24 = vsub.f32 %v136_v0, %v149_v22 }
 0x21f   :  { %v152_v25 = vmul.f32 1.442695, %v150_v23  ;;  %v154_v26 = vmul.f32 1.442695, %v151_v24 }
 0x221   :  { %700 = vpow2.f32 %v152_v25 }
 0x222   :  { %702 = vpow2.f32 %v154_v26 }
 0x22e   :  { %v701_v27 = vpop.eup %700 }
 0x22f   :  { %v703_v29 = vpop.eup %702  ;;  %v156_v30 = vsel %vm140_vm1, %v701_v27, 0.0 }
 0x230   :  { %v157_v31 = vsel %vm140_vm1, %v703_v29, 0.0 }
 0x231   :  { %v158_v33 = vadd.f32 %v157_v31, %v156_v30 }
 0x233   :  { %v159_v34 = vrot.slane %v158_v33, 4 }
 0x235   :  { %v160_v35 = vadd.f32 %v159_v34, %v158_v33 }
 0x237   :  { %v161_v36 = vrot.slane %v160_v35, 2 }
 0x239   :  { %v162_v37 = vadd.f32 %v161_v36, %v160_v35 }
 0x23b   :  { %v163_v38 = vrot.slane %v162_v37, 1 }
 0x23d   :  { %v164_v39 = vadd.f32 %v163_v38, %v162_v37 }
 0x23f   :  { %704 = vrcp.f32 %v164_v39 }
 0x240   :  { %706 = vlog2.f32 %v164_v39 }
 0x241   :  { %708 = vrcp.f32 %v357_v58 }
 0x24c   :  { %v705_v40 = vpop.eup %704 }
 0x24d   :  { %v167_v41 = vmul.f32 %v705_v40, %v703_v29  ;;  %v166_v42 = vmul.f32 %v705_v40, %v701_v27  ;;  %v707_v53 = vpop.eup %706 }
 0x24e   :  { %v169_v55 = vmul.f32 0.6931472, %v707_v53  ;;  %v709_v59 = vpop.eup %708 }
 0x24f   :  { %v171_v43 = vmul.f32 %v167_v41, %v151_v24  ;;  %v170_v44 = vmul.f32 %v166_v42, %v150_v23  ;;  %184 = vxpose.xlu0.b32.start [1/2] (short) (narrow) %v166_v42, 16  ;;  %v364_v62 = vmul.f32 %v709_v59, %v802_v4  ;;  %v363_v5 = vmul.f32 %v709_v59, %v797_v3 }
 0x251   :  { %v173_v45 = vsel %vm140_vm1, %v171_v43, 0.0  ;;  %v172_v46 = vsel %vm140_vm1, %v170_v44, 0.0 }
 0x252   :  { %v174_v48 = vadd.f32 %v173_v45, %v172_v46 }
 0x253   :  { %185 = vxpose.xlu0.b32.end [2/2] (short) (narrow) %v167_v41, 16 }
 0x254   :  { %v175_v49 = vrot.slane %v174_v48, 4 }
 0x256   :  { %v176_v50 = vadd.f32 %v175_v49, %v174_v48 }
 0x258   :  { %v177_v51 = vrot.slane %v176_v50, 2 }
 0x25a   :  { %v178_v52 = vadd.f32 %v177_v51, %v176_v50 }
 0x25c   :  { %v179_v54 = vrot.slane %v178_v52, 1 }
 0x25e   :  { %v180_v56 = vadd.f32 %v179_v54, %v178_v52 }
 0x260   :  { %v181_v57 = vsub.f32 %v169_v55, %v180_v56 }
 0x262   :  { %183 = vst.msk [vmem:[%s910_s2] sm:$0x1] %vm182_vm2, %v181_v57 }
 0x2cb   :  { %v200_v60 = vpop.trf.xlu0 }
 0x2cc   :  { %652 = vmatmul.mubr.msk.f32.vlgmr.msra.gmra.mxu1 %vm140_vm1, %v200_v60 }
 0x2cd   :  { %409 = vmatpush1.xpose.msra.mxu1 %v366_v61  ;;  %292 = vmatprep.mubr.f32.mxu1 %v718_v8 }
 0x2ce   :  { %663 = vmatprep.subr.msk.mxu1 %vm18_vm0, %v364_v62 }
 0x2cf   :  { %v201_v63 = vpop.trf.xlu0 }
 0x2d0   :  { %653 = vmatmul.mubr.msk.f32.gmra.mxu1 %vm140_vm1, %v201_v63 }
 0x2d1   :  { %411 = vmatpush1.xpose.msra.mxu1 %v363_v5  ;;  %664 = vmatprep.mubr.msk.f32.mxu1 %vm18_vm0, %v777_v28 }
 0x2d4   :  { %445 = vmatmul.mubr.f32.vlgmr.msra.gmra.mxu1 %v783_v32 }
 0x2d5   :  { %665 = vmatprep.mubr.msk.f32.mxu1 %vm18_vm0, %v769_v13 }
 0x2d8   :  { %450 = vmatmul.mubr.f32.gmra.mxu1 %v764_v12 }
 0x38c   :  { %v840_v47 = vpop.f32.mrf.mxu1 }
 0x38e   :  { %v842_v4 = vpop.f32.mrf.mxu1 }
 0x38f   :  { %v299_v3 = vsel %vm18_vm0, %v842_v4, 0.0 }
 0x390   :  { %v846_v2 = vpop.f32.mrf.mxu1  ;;  %v300_v6 = vadd.f32 %v299_v3, %v840_v47 }
 0x392   :  { %301 = vadd.xlane.f32.xlu0 %v300_v6  ;;  %v849_v28 = vpop.f32.mrf.mxu1 }
 0x393   :  { %v303_v53 = vsel %vm18_vm0, %v849_v28, 0.0 }
 0x394   :  { %v446_v32 = vpop.f32.mrf.mxu1  ;;  %v304_v54 = vadd.f32 %v303_v53, %v846_v2 }
 0x395   :  { %v455_v13 = vsel %vm140_vm1, %v446_v32, -inf }
 0x396   :  { %v448_v7 = vpop.f32.mrf.mxu1 }
 0x398   :  { %v451_v1 = vpop.f32.mrf.mxu1 }
 0x399   :  { %v456_v12 = vsel %vm140_vm1, %v451_v1, -inf }
 0x39a   :  { %v457_v9 = vmax.f32 %v455_v13, %v456_v12  ;;  %v453_v10 = vpop.f32.mrf.mxu1 }
 0x39c   :  { %v458_v0 = vrot.slane %v457_v9, 4 }
 0x39e   :  { %v459_v11 = vmax.f32 %v457_v9, %v458_v0 }
 0x3a0   :  { %v460_v14 = vrot.slane %v459_v11, 2 }
 0x3a2   :  { %v461_v15 = vmax.f32 %v459_v11, %v460_v14 }
 0x3a4   :  { %v462_v16 = vrot.slane %v461_v15, 1 }
 0x3a6   :  { %v463_v17 = vmax.f32 %v461_v15, %v462_v16 }
 0x3a8   :  { %v464_v18 = vsub.f32 %v446_v32, %v463_v17  ;;  %v465_v19 = vsub.f32 %v451_v1, %v463_v17 }
 0x3aa   :  { %v466_v20 = vmul.f32 1.442695, %v464_v18  ;;  %v468_v21 = vmul.f32 1.442695, %v465_v19 }
 0x3ac   :  { %710 = vpow2.f32 %v466_v20 }
 0x3ad   :  { %712 = vpow2.f32 %v468_v21 }
 0x3b9   :  { %v711_v22 = vpop.eup %710 }
 0x3ba   :  { %v713_v23 = vpop.eup %712  ;;  %v470_v24 = vsel %vm140_vm1, %v711_v22, 0.0 }
 0x3bb   :  { %v471_v25 = vsel %vm140_vm1, %v713_v23, 0.0 }
 0x3bc   :  { %v472_v26 = vadd.f32 %v471_v25, %v470_v24 }
 0x3be   :  { %v473_v27 = vrot.slane %v472_v26, 4 }
 0x3c0   :  { %v474_v29 = vadd.f32 %v473_v27, %v472_v26 }
 0x3c2   :  { %v475_v30 = vrot.slane %v474_v29, 2 }
 0x3c4   :  { %v476_v31 = vadd.f32 %v475_v30, %v474_v29 }
 0x3c6   :  { %v477_v33 = vrot.slane %v476_v31, 1 }
 0x3c8   :  { %v478_v34 = vadd.f32 %v477_v33, %v476_v31 }
 0x3ca   :  { %714 = vrcp.f32 %v478_v34 }
 0x3cb   :  { %716 = vlog2.f32 %v478_v34 }
 0x3d7   :  { %v715_v35 = vpop.eup %714 }
 0x3d8   :  { %v481_v36 = vmul.f32 %v715_v35, %v713_v23  ;;  %v480_v37 = vmul.f32 %v715_v35, %v711_v22  ;;  %v717_v48 = vpop.eup %716 }
 0x3d9   :  { %v483_v50 = vmul.f32 0.6931472, %v717_v48 }
 0x3da   :  { %v485_v38 = vmul.f32 %v481_v36, %v465_v19  ;;  %498 = vxpose.xlu1.b32.start [1/2] (short) (narrow) %v480_v37, 16  ;;  %v484_v39 = vmul.f32 %v480_v37, %v464_v18 }
 0x3dc   :  { %v487_v40 = vsel %vm140_vm1, %v485_v38, 0.0  ;;  %v486_v41 = vsel %vm140_vm1, %v484_v39, 0.0 }
 0x3dd   :  { %v488_v42 = vadd.f32 %v487_v40, %v486_v41 }
 0x3de   :  { %499 = vxpose.xlu1.b32.end [2/2] (short) (narrow) %v481_v36, 16 }
 0x3df   :  { %v489_v43 = vrot.slane %v488_v42, 4 }
 0x3e1   :  { %v490_v44 = vadd.f32 %v489_v43, %v488_v42 }
 0x3e3   :  { %v491_v45 = vrot.slane %v490_v44, 2 }
 0x3e5   :  { %v492_v46 = vadd.f32 %v491_v45, %v490_v44 }
 0x3e7   :  { %v493_v49 = vrot.slane %v492_v46, 1 }
 0x3e9   :  { %v494_v51 = vadd.f32 %v493_v49, %v492_v46 }
 0x3eb   :  { %v495_v52 = vsub.f32 %v483_v50, %v494_v51 }
 0x3ed   :  { %666 = vst.msk [vmem:[%s910_s2 + $0x1] sm:$0x1] %vm182_vm2, %v495_v52 }
 0x405   :  { %305 = vadd.xlane.f32.xlu1 %v304_v54 }
 0x41b   :  { %v302_v55 = vpop.xlane.xlu0 %301 }
 0x41c   :  { %v307_v56 = vmul.f32 0.0051020407, %v302_v55 }
 0x41e   :  { %vm309_vm3 = vcmp.gt.f32.partialorder %v840_v47, %v307_v56  ;;  %vm310_vm4 = vcmp.gt.f32.partialorder %v842_v4, %v307_v56 }
 0x41f   :  { %v654_v57 = vsel %vm309_vm3, 1.0, %v718_v8  ;;  %v655_v58 = vsel %vm310_vm4, 1.0, %v718_v8 }
 0x420   :  { %321 = vst [vmem:[%s911_s1] sm:$0xff] %v654_v57  ;;  %322 = vst.msk [vmem:[%s911_s1 + $0x8] sm:$0xff] %vm18_vm0, %v655_v58 }
 0x456   :  { %v514_v59 = vpop.trf.xlu1 }
 0x457   :  { %667 = vmatmul.mubr.msk.f32.vlgmr.msra.gmra.mxu0 %vm140_vm1, %v514_v59 }
 0x458   :  { %606 = vmatprep.mubr.f32.mxu0 %v718_v8 }
 0x45a   :  { %v515_v60 = vpop.trf.xlu1 }
 0x45b   :  { %668 = vmatmul.mubr.msk.f32.gmra.mxu0 %vm140_vm1, %v515_v60 }
 0x48e   :  { %v306_v61 = vpop.xlane.xlu1 %305 }
 0x48f   :  { %v308_v62 = vmul.f32 0.0051020407, %v306_v61 }
 0x491   :  { %vm311_vm5 = vcmp.gt.f32.partialorder %v846_v2, %v308_v62  ;;  %vm312_vm6 = vcmp.gt.f32.partialorder %v849_v28, %v308_v62 }
 0x492   :  { %v656_v63 = vsel %vm311_vm5, 1.0, %v718_v8  ;;  %v657_v5 = vsel %vm312_vm6, 1.0, %v718_v8 }
 0x493   :  { %323 = vst [vmem:[%s911_s1 + $0x10] sm:$0xff] %v656_v63  ;;  %324 = vst.msk [vmem:[%s911_s1 + $0x18] sm:$0xff] %vm18_vm0, %v657_v5 }
 0x517   :  { %v602_v47 = vpop.f32.mrf.mxu0 }
 0x519   :  { %v604_v4 = vpop.f32.mrf.mxu0 }
 0x51a   :  { %v613_v3 = vsel %vm18_vm0, %v604_v4, 0.0 }
 0x51b   :  { %v608_v2 = vpop.f32.mrf.mxu0  ;;  %v614_v6 = vadd.f32 %v613_v3, %v602_v47 }
 0x51d   :  { %615 = vadd.xlane.f32.xlu0 %v614_v6  ;;  %v610_v28 = vpop.f32.mrf.mxu0 }
 0x51e   :  { %v617_v32 = vsel %vm18_vm0, %v610_v28, 0.0 }
 0x51f   :  { %v618_v7 = vadd.f32 %v617_v32, %v608_v2 }
 0x521   :  { %619 = vadd.xlane.f32.xlu1 %v618_v7 }
 0x5a6   :  { %v616_v1 = vpop.xlane.xlu0 %615 }
 0x5a7   :  { %v621_v13 = vmul.f32 0.0051020407, %v616_v1 }
 0x5a9   :  { %vm623_vm7 = vcmp.gt.f32.partialorder %v602_v47, %v621_v13  ;;  %vm624_vm8 = vcmp.gt.f32.partialorder %v604_v4, %v621_v13 }
 0x5aa   :  { %v669_v12 = vsel %vm623_vm7, 1.0, %v718_v8  ;;  %v670_v9 = vsel %vm624_vm8, 1.0, %v718_v8  ;;  %v620_v10 = vpop.xlane.xlu1 %619 }
 0x5ab   :  { %673 = vst [vmem:[%s911_s1 + $0x20] sm:$0xff] %v669_v12  ;;  %674 = vst.msk [vmem:[%s911_s1 + $0x28] sm:$0xff] %vm18_vm0, %v670_v9  ;;  %v622_v0 = vmul.f32 0.0051020407, %v620_v10 }
 0x5ad   :  { %vm625_vm9 = vcmp.gt.f32.partialorder %v608_v2, %v622_v0  ;;  %vm626_vm10 = vcmp.gt.f32.partialorder %v610_v28, %v622_v0 }
 0x5ae   :  { %v671_v11 = vsel %vm625_vm9, 1.0, %v718_v8  ;;  %v672_v14 = vsel %vm626_vm10, 1.0, %v718_v8 }
 0x5af   :  { %675 = vst [vmem:[%s911_s1 + $0x30] sm:$0xff] %v671_v11  ;;  %676 = vst.msk [vmem:[%s911_s1 + $0x38] sm:$0xff] %vm18_vm0, %v672_v14 }

</bundles_post_ra>
